<compile_context>
chip_gen: v5e
topology: v5e:2x2
jax: 0.10.0
libtpu: 0.0.40
codegen_flags: <defaults>
</compile_context>

<pallas_src>
import math
from typing import NamedTuple

import jax
import jax.numpy as jnp
from jax.experimental import pallas as pl
from jax.experimental.pallas import tpu as pltpu


def _round_up(x: int, m: int) -> int:
    return ((x + m - 1) // m) * m


def _pick_tile(total_padded: int, cap: int) -> int:
    """Largest multiple of 128 that divides `total_padded` and is <= cap."""
    cap = max(128, (cap // 128) * 128)
    best, t = 128, 128
    while t <= min(cap, total_padded):
        if total_padded % t == 0:
            best = t
        t += 128
    return best


# ---------------------------------------------------------------------------
# Kernels
# ---------------------------------------------------------------------------
def _noisy_two_matmul_kernel(x_ref, wmu_ref, wsig_ref, ein_ref, eout_ref,
                             bmu_ref, bsig_ref, o_ref, acc_mu, acc_sig):
    """Small/medium-batch form: noise applied to the (tm, tk) x tile.

    acc_mu  += x            @ Wmu   (bf16 MXU, f32 acc)
    acc_sig += (x * eps_in) @ Wsig
    y = acc_mu + acc_sig * eps_out + (bias_mu + bias_sigma * eps_out)
    """
    k = pl.program_id(2)

    @pl.when(k == 0)
    def _init():
        acc_mu[...] = jnp.zeros_like(acc_mu)
        acc_sig[...] = jnp.zeros_like(acc_sig)

    tk = x_ref.shape[1]
    x = x_ref[...]                                        # (tm, tk) f32
    start = pl.multiple_of(k * tk, 128)
    ein = ein_ref[:, pl.ds(start, tk)]                    # (1, tk)  f32

    x_bf = x.astype(jnp.bfloat16)
    xs_bf = (x * ein).astype(jnp.bfloat16)                # f32 VPU math, bf16 operand

    acc_mu[...] += jnp.dot(x_bf, wmu_ref[...],
                           preferred_element_type=jnp.float32)
    acc_sig[...] += jnp.dot(xs_bf, wsig_ref[...],
                            preferred_element_type=jnp.float32)

    @pl.when(k == pl.num_programs(2) - 1)
    def _finalize():
        eout = eout_ref[...]                              # (1, tn) f32
        b_eff = bmu_ref[...] + bsig_ref[...] * eout
        o_ref[...] = (acc_mu[...] + acc_sig[...] * eout + b_eff).astype(o_ref.dtype)


def _noisy_single_matmul_kernel(x_ref, wmu_ref, wsig_ref, ein_col_ref, eout_ref,
                                bmu_ref, bsig_ref, o_ref, acc_ref):
    """Large-batch form: rebuild the noisy (tk, tn) weight tile once per (j,k).

    Weights are stored (in, out), so weight_epsilon.T = eps_in ⊗ eps_out.
    """
    k = pl.program_id(2)

    @pl.when(k == 0)
    def _init():
        acc_ref[...] = jnp.zeros_like(acc_ref)

    outer = ein_col_ref[...] * eout_ref[...]              # (tk,1)*(1,tn) -> (tk,tn) f32
    w_eff = (wmu_ref[...].astype(jnp.float32)
             + wsig_ref[...].astype(jnp.float32) * outer).astype(jnp.bfloat16)

    acc_ref[...] += jnp.dot(x_ref[...].astype(jnp.bfloat16), w_eff,
                            preferred_element_type=jnp.float32)

    @pl.when(k == pl.num_programs(2) - 1)
    def _finalize():
        b_eff = bmu_ref[...] + bsig_ref[...] * eout_ref[...]
        o_ref[...] = (acc_ref[...] + b_eff).astype(o_ref.dtype)


# ---------------------------------------------------------------------------
# Parameter preparation (done ONCE, hoisted out of the forward path)
# ---------------------------------------------------------------------------
class NoisyLinearParams(NamedTuple):
    in_features: int
    out_features: int
    Kp: int
    Np: int
    wmu_t: jax.Array      # (Kp, Np)  weight dtype (bf16 by default)
    wsig_t: jax.Array     # (Kp, Np)
    ein_row: jax.Array    # (1, Kp)   f32
    ein_col: jax.Array    # (Kp, 1)   f32
    eout_row: jax.Array   # (1, Np)   f32 (also bias_epsilon)
    bmu_row: jax.Array    # (1, Np)   f32
    bsig_row: jax.Array   # (1, Np)   f32


def prepare_noisy_linear_params(weight_mu, weight_sigma, bias_mu, bias_sigma,
                                eps_in, eps_out, *, weight_dtype=jnp.bfloat16):
    """Pad to 128 multiples, transpose weights to (in, out) and cast to bf16."""
    out_f, in_f = weight_mu.shape
    Kp = _round_up(in_f, 128)
    Np = _round_up(out_f, 128)

    def pad2(a, rows, cols):
        a = jnp.asarray(a, jnp.float32)
        return jnp.pad(a, ((0, rows - a.shape[0]), (0, cols - a.shape[1])))

    return NoisyLinearParams(
        in_features=in_f, out_features=out_f, Kp=Kp, Np=Np,
        wmu_t=pad2(weight_mu.T, Kp, Np).astype(weight_dtype),
        wsig_t=pad2(weight_sigma.T, Kp, Np).astype(weight_dtype),
        ein_row=pad2(eps_in.reshape(1, -1), 1, Kp),
        ein_col=pad2(eps_in.reshape(-1, 1), Kp, 1),
        eout_row=pad2(eps_out.reshape(1, -1), 1, Np),
        bmu_row=pad2(bias_mu.reshape(1, -1), 1, Np),
        bsig_row=pad2(bias_sigma.reshape(1, -1), 1, Np),
    )


# ---------------------------------------------------------------------------
# Forward
# ---------------------------------------------------------------------------
def noisy_linear_forward(x, params: NoisyLinearParams, *,
                         tm_max=1024, tn_max=512, tk_max=2048, two_matmul=None):
    """y = x @ (Wmu + Wsig * outer(eps_out, eps_in)).T + (bmu + bsig * eps_out)."""
    B, in_f = x.shape
    if in_f != params.in_features:
        raise ValueError(f"in_features mismatch: {in_f} vs {params.in_features}")
    Kp, Np, out_f = params.Kp, params.Np, params.out_features

    # Tile selection: tm as large as the batch (gi = 1 -> weights streamed once),
    # tn/tk as big divisors of the padded dims (no per-call weight re-pad).
    tm = min(_round_up(B, 8), _round_up(max(tm_max, 8), 8))
    tn = _pick_tile(Np, tn_max)
    tk = _pick_tile(Kp, tk_max)

    Bp = _round_up(B, tm)
    gi = Bp // tm
    # Keep >= 2 "parallel" output blocks so v7x's two TensorCores both get work.
    if gi == 1 and Np // tn == 1 and Np >= 256:
        tn = _pick_tile(Np, Np // 2)
    gj, gk = Np // tn, Kp // tk

    if two_matmul is None:
        two_matmul = tm <= tn   # noise-on-x form wins for small/medium batch

    x = x.astype(jnp.float32)
    if (Bp, Kp) != (B, in_f):
        x = jnp.pad(x, ((0, Bp - B), (0, Kp - in_f)))

    wbytes = jnp.dtype(params.wmu_t.dtype).itemsize
    n_acc = 2 if two_matmul else 1

    # VMEM working set: double-buffered inputs/outputs + f32 accumulator(s).
    need = (2 * 2 * tk * tn * wbytes          # wmu + wsig blocks, 2 buffers each
            + 2 * tm * tk * 4                 # x block, 2 buffers
            + 2 * tm * tn * 4                 # output block, 2 buffers
            + n_acc * tm * tn * 4             # accumulator scratch
            + 2 * (Kp + tk + 3 * tn) * 4)     # eps / bias vectors
    vmem_limit = int(min(max(2 * need, 32 * 1024 * 1024), 48 * 1024 * 1024))

    cost = pl.CostEstimate(
        flops=2 * Bp * Kp * Np * n_acc,
        transcendentals=0,
        bytes_accessed=(2 * Kp * Np * wbytes * gi   # both weight streams
                        + Bp * Kp * 4 * gj          # x re-read per out tile
                        + Bp * Np * 4               # output
                        + 4 * (2 * Kp + 3 * Np)),
    )

    x_spec = pl.BlockSpec((tm, tk), lambda i, j, k: (i, k))
    w_spec = pl.BlockSpec((tk, tn), lambda i, j, k: (k, j))
    row_spec = pl.BlockSpec((1, tn), lambda i, j, k: (0, j))

    if two_matmul:
        kernel = _noisy_two_matmul_kernel
        # eps_in loaded once: full (1, Kp) row with a constant index_map.
        eps_spec = pl.BlockSpec((1, Kp), lambda i, j, k: (0, 0))
        eps_arg = params.ein_row
        scratch = [pltpu.VMEM((tm, tn), jnp.float32),
                   pltpu.VMEM((tm, tn), jnp.float32)]
    else:
        kernel = _noisy_single_matmul_kernel
        eps_spec = pl.BlockSpec((tk, 1), lambda i, j, k: (k, 0))
        eps_arg = params.ein_col
        scratch = [pltpu.VMEM((tm, tn), jnp.float32)]

    out_padded = pl.pallas_call(
        kernel,
        out_shape=jax.ShapeDtypeStruct((Bp, Np), jnp.float32),
        grid_spec=pltpu.PrefetchScalarGridSpec(
            num_scalar_prefetch=0,
            grid=(gi, gj, gk),
            in_specs=[x_spec, w_spec, w_spec, eps_spec,
                      row_spec, row_spec, row_spec],
            out_specs=pl.BlockSpec((tm, tn), lambda i, j, k: (i, j)),
            scratch_shapes=scratch),
        compiler_params=pltpu.CompilerParams(
            dimension_semantics=("parallel", "parallel", "arbitrary"),
            vmem_limit_bytes=vmem_limit),
        cost_estimate=cost,
    )(x, params.wmu_t, params.wsig_t, eps_arg,
      params.eout_row, params.bmu_row, params.bsig_row)

    if (Bp, Np) != (B, out_f):
        return out_padded[:B, :out_f]
    return out_padded


# ---------------------------------------------------------------------------
# Deterministic parameter / noise construction, mirroring NoisyLinear.__init__
# (noise generation happens host-side in plain JAX, like reset_noise()).
# ---------------------------------------------------------------------------
def _scale_noise(key, size):
    x = jax.random.normal(key, (size,), dtype=jnp.float32)
    return jnp.sign(x) * jnp.sqrt(jnp.abs(x))


def make_noisy_linear_params(key, in_features, out_features, std_init=0.5):
    k_wmu, k_bmu, k_ein, k_eout = jax.random.split(key, 4)
    mu_range = 1.0 / math.sqrt(in_features)

    weight_mu = jax.random.uniform(
        k_wmu, (out_features, in_features), jnp.float32, -mu_range, mu_range)
    weight_sigma = jnp.full((out_features, in_features),
                            std_init / math.sqrt(in_features), jnp.float32)
    bias_mu = jax.random.uniform(
        k_bmu, (out_features,), jnp.float32, -mu_range, mu_range)
    bias_sigma = jnp.full((out_features,),
                          std_init / math.sqrt(out_features), jnp.float32)

    eps_in = _scale_noise(k_ein, in_features)
    eps_out = _scale_noise(k_eout, out_features)   # weight_eps = outer(eps_out, eps_in)
    return weight_mu, weight_sigma, bias_mu, bias_sigma, eps_in, eps_out


def _reference(x, wmu, wsig, bmu, bsig, eps_in, eps_out):
    w_eff = wmu + wsig * jnp.outer(eps_out, eps_in)
    b_eff = bmu + bsig * eps_out
    return x @ w_eff.T + b_eff


if __name__ == "__main__":
    def run_case(key, batch, in_f, out_f, **fwd_kwargs):
        kp, kx = jax.random.split(key)
        raw = make_noisy_linear_params(kp, in_f, out_f)
        x = jax.random.normal(kx, (batch, in_f), dtype=jnp.float32)

        prepared = prepare_noisy_linear_params(*raw)     # once per reset_noise()
        y = jax.block_until_ready(noisy_linear_forward(x, prepared, **fwd_kwargs))
        y_ref = _reference(x, *raw)

        assert y.shape == (batch, out_f)
        # bf16 weights / MXU operands -> compare with a loose (but meaningful)
        # normalized tolerance against the f32 reference.
        err = float(jnp.max(jnp.abs(y - y_ref)) / (jnp.max(jnp.abs(y_ref)) + 1e-6))
        assert err < 2e-2, f"normalized max error too large: {err}"

    k0, k1, k2 = jax.random.split(jax.random.PRNGKey(0), 3)

    # Tiny shapes: padding path, single grid step, two-matmul (noise-on-x) kernel.
    run_case(k0, batch=8, in_f=32, out_f=16)

    # Medium batch: single-matmul (weight-rebuild) kernel, output split into
    # two "parallel" blocks (gj=2) for megacore sharding.
    run_case(k1, batch=160, in_f=512, out_f=256)

    # Small batch, long reduction: two-matmul kernel with multi-step k
    # accumulation (tk_max=512 -> gk=5 over Kp=1280).
    run_case(k2, batch=8, in_f=1200, out_f=272, tk_max=512)

    print("KERNEL_OK")
</pallas_src>

<mosaic_0001>
module attributes {stable_mosaic.version = 11 : i64} {
  func.func @_noisy_two_matmul_kernel(%arg0: i32, %arg1: i32, %arg2: i32, %arg3: memref<8x128xf32, #tpu.memory_space<vmem>>, %arg4: memref<128x128xbf16, #tpu.memory_space<vmem>>, %arg5: memref<128x128xbf16, #tpu.memory_space<vmem>>, %arg6: memref<1x128xf32, #tpu.memory_space<vmem>>, %arg7: memref<1x128xf32, #tpu.memory_space<vmem>>, %arg8: memref<1x128xf32, #tpu.memory_space<vmem>>, %arg9: memref<1x128xf32, #tpu.memory_space<vmem>>, %arg10: memref<8x128xf32, #tpu.memory_space<vmem>>, %arg11: memref<8x128xf32, #tpu.memory_space<vmem>>, %arg12: memref<8x128xf32, #tpu.memory_space<vmem>>) attributes {dimension_semantics = [#tpu.dimension_semantics<parallel>, #tpu.dimension_semantics<parallel>, #tpu.dimension_semantics<arbitrary>], iteration_bounds = array<i64: 1, 1, 1>, scalar_prefetch = 0 : i64, scratch_operands = 2 : i64, tpu.core_type = #tpu.core_type<tc>, window_params = [{transform_indices = @transform_0, window_bounds = array<i64: 8, 128>}, {transform_indices = @transform_1, window_bounds = array<i64: 128, 128>}, {transform_indices = @transform_2, window_bounds = array<i64: 128, 128>}, {pipeline_mode = #tpu.pipeline_mode<synchronous>, transform_indices = @transform_3, window_bounds = array<i64: 1, 128>}, {transform_indices = @transform_4, window_bounds = array<i64: 1, 128>}, {transform_indices = @transform_5, window_bounds = array<i64: 1, 128>}, {transform_indices = @transform_6, window_bounds = array<i64: 1, 128>}, {transform_indices = @transform_7, window_bounds = array<i64: 8, 128>}]} {
    %c0_i32 = arith.constant 0 : i32
    %0 = arith.cmpi eq, %arg2, %c0_i32 : i32
    %1 = arith.extui %0 : i1 to i32
    %c0_i32_0 = arith.constant 0 : i32
    %2 = arith.cmpi ne, %1, %c0_i32_0 : i32
    scf.if %2 {
      %cst_18 = arith.constant 0.000000e+00 : f32
      %25 = vector.broadcast %cst_18 : f32 to vector<8x128xf32>
      %c0_19 = arith.constant 0 : index
      %c0_20 = arith.constant 0 : index
      %26 = vector.load %arg11[%c0_19, %c0_20] : memref<8x128xf32, #tpu.memory_space<vmem>>, vector<8x128xf32>
      tpu.vector_store %arg11[%c0_19, %c0_20], %25 {strides = array<i32>} : memref<8x128xf32, #tpu.memory_space<vmem>>, vector<8x128xf32>,
      %cst_21 = arith.constant 0.000000e+00 : f32
      %27 = vector.broadcast %cst_21 : f32 to vector<8x128xf32>
      %c0_22 = arith.constant 0 : index
      %c0_23 = arith.constant 0 : index
      %28 = vector.load %arg12[%c0_22, %c0_23] : memref<8x128xf32, #tpu.memory_space<vmem>>, vector<8x128xf32>
      tpu.vector_store %arg12[%c0_22, %c0_23], %27 {strides = array<i32>} : memref<8x128xf32, #tpu.memory_space<vmem>>, vector<8x128xf32>,
    } else {
    }
    %c0 = arith.constant 0 : index
    %c0_1 = arith.constant 0 : index
    %3 = vector.load %arg3[%c0, %c0_1] : memref<8x128xf32, #tpu.memory_space<vmem>>, vector<8x128xf32>
    %c128_i32 = arith.constant 128 : i32
    %4 = arith.muli %arg2, %c128_i32 : i32
    %5 = tpu.assume_multiple %4, 128 : i32
    %c0_2 = arith.constant 0 : index
    %6 = arith.index_cast %5 : i32 to index
    %7 = vector.load %arg6[%c0_2, %6] : memref<1x128xf32, #tpu.memory_space<vmem>>, vector<1x128xf32>
    %8 = arith.truncf %3 : vector<8x128xf32> to vector<8x128xbf16>
    %9 = vector.broadcast %7 : vector<1x128xf32> to vector<8x128xf32>
    %10 = arith.mulf %3, %9 : vector<8x128xf32>
    %11 = arith.truncf %10 : vector<8x128xf32> to vector<8x128xbf16>
    %c0_3 = arith.constant 0 : index
    %c0_4 = arith.constant 0 : index
    %12 = vector.load %arg11[%c0_3, %c0_4] : memref<8x128xf32, #tpu.memory_space<vmem>>, vector<8x128xf32>
    %c0_5 = arith.constant 0 : index
    %c0_6 = arith.constant 0 : index
    %13 = vector.load %arg4[%c0_5, %c0_6] : memref<128x128xbf16, #tpu.memory_space<vmem>>, vector<128x128xbf16>
    %cst = arith.constant dense<0.000000e+00> : vector<8x128xf32>
    %14 = tpu.matmul %8, %13, %cst {dimension_numbers = #tpu.dot_dimension_numbers<[1], [0], [0], [1], [0, 0, 1, 1], [], []>} : vector<8x128xbf16>, vector<128x128xbf16>, vector<8x128xf32> -> vector<8x128xf32>
    %15 = arith.addf %12, %14 : vector<8x128xf32>
    %c0_7 = arith.constant 0 : index
    %c0_8 = arith.constant 0 : index
    %16 = vector.load %arg11[%c0_7, %c0_8] : memref<8x128xf32, #tpu.memory_space<vmem>>, vector<8x128xf32>
    tpu.vector_store %arg11[%c0_7, %c0_8], %15 {strides = array<i32>} : memref<8x128xf32, #tpu.memory_space<vmem>>, vector<8x128xf32>,
    %c0_9 = arith.constant 0 : index
    %c0_10 = arith.constant 0 : index
    %17 = vector.load %arg12[%c0_9, %c0_10] : memref<8x128xf32, #tpu.memory_space<vmem>>, vector<8x128xf32>
    %c0_11 = arith.constant 0 : index
    %c0_12 = arith.constant 0 : index
    %18 = vector.load %arg5[%c0_11, %c0_12] : memref<128x128xbf16, #tpu.memory_space<vmem>>, vector<128x128xbf16>
    %cst_13 = arith.constant dense<0.000000e+00> : vector<8x128xf32>
    %19 = tpu.matmul %11, %18, %cst_13 {dimension_numbers = #tpu.dot_dimension_numbers<[1], [0], [0], [1], [0, 0, 1, 1], [], []>} : vector<8x128xbf16>, vector<128x128xbf16>, vector<8x128xf32> -> vector<8x128xf32>
    %20 = arith.addf %17, %19 : vector<8x128xf32>
    %c0_14 = arith.constant 0 : index
    %c0_15 = arith.constant 0 : index
    %21 = vector.load %arg12[%c0_14, %c0_15] : memref<8x128xf32, #tpu.memory_space<vmem>>, vector<8x128xf32>
    tpu.vector_store %arg12[%c0_14, %c0_15], %20 {strides = array<i32>} : memref<8x128xf32, #tpu.memory_space<vmem>>, vector<8x128xf32>,
    %c0_i32_16 = arith.constant 0 : i32
    %22 = arith.cmpi eq, %arg2, %c0_i32_16 : i32
    %23 = arith.extui %22 : i1 to i32
    %c0_i32_17 = arith.constant 0 : i32
    %24 = arith.cmpi ne, %23, %c0_i32_17 : i32
    scf.if %24 {
      %c0_18 = arith.constant 0 : index
      %c0_19 = arith.constant 0 : index
      %25 = vector.load %arg7[%c0_18, %c0_19] : memref<1x128xf32, #tpu.memory_space<vmem>>, vector<1x128xf32>
      %c0_20 = arith.constant 0 : index
      %c0_21 = arith.constant 0 : index
      %26 = vector.load %arg8[%c0_20, %c0_21] : memref<1x128xf32, #tpu.memory_space<vmem>>, vector<1x128xf32>
      %c0_22 = arith.constant 0 : index
      %c0_23 = arith.constant 0 : index
      %27 = vector.load %arg9[%c0_22, %c0_23] : memref<1x128xf32, #tpu.memory_space<vmem>>, vector<1x128xf32>
      %28 = arith.mulf %27, %25 : vector<1x128xf32>
      %29 = arith.addf %26, %28 : vector<1x128xf32>
      %c0_24 = arith.constant 0 : index
      %c0_25 = arith.constant 0 : index
      %30 = vector.load %arg11[%c0_24, %c0_25] : memref<8x128xf32, #tpu.memory_space<vmem>>, vector<8x128xf32>
      %c0_26 = arith.constant 0 : index
      %c0_27 = arith.constant 0 : index
      %31 = vector.load %arg12[%c0_26, %c0_27] : memref<8x128xf32, #tpu.memory_space<vmem>>, vector<8x128xf32>
      %32 = vector.broadcast %25 : vector<1x128xf32> to vector<8x128xf32>
      %33 = arith.mulf %31, %32 : vector<8x128xf32>
      %34 = arith.addf %30, %33 : vector<8x128xf32>
      %35 = vector.broadcast %29 : vector<1x128xf32> to vector<8x128xf32>
      %36 = arith.addf %34, %35 : vector<8x128xf32>
      %c0_28 = arith.constant 0 : index
      %c0_29 = arith.constant 0 : index
      %37 = vector.load %arg10[%c0_28, %c0_29] : memref<8x128xf32, #tpu.memory_space<vmem>>, vector<8x128xf32>
      tpu.vector_store %arg10[%c0_28, %c0_29], %36 {strides = array<i32>} : memref<8x128xf32, #tpu.memory_space<vmem>>, vector<8x128xf32>,
    } else {
    }
    return
  }
  func.func @transform_0(%arg0: i32, %arg1: i32, %arg2: i32) -> (i32, i32) {
    %c0_i32 = arith.constant 0 : i32
    return %arg0, %arg2 : i32, i32
  }
  func.func @transform_1(%arg0: i32, %arg1: i32, %arg2: i32) -> (i32, i32) {
    %c0_i32 = arith.constant 0 : i32
    return %arg2, %arg1 : i32, i32
  }
  func.func @transform_2(%arg0: i32, %arg1: i32, %arg2: i32) -> (i32, i32) {
    %c0_i32 = arith.constant 0 : i32
    return %arg2, %arg1 : i32, i32
  }
  func.func @transform_3(%arg0: i32, %arg1: i32, %arg2: i32) -> (i32, i32) {
    %c0_i32 = arith.constant 0 : i32
    %c0_i32_0 = arith.constant 0 : i32
    %c0_i32_1 = arith.constant 0 : i32
    return %c0_i32, %c0_i32_0 : i32, i32
  }
  func.func @transform_4(%arg0: i32, %arg1: i32, %arg2: i32) -> (i32, i32) {
    %c0_i32 = arith.constant 0 : i32
    %c0_i32_0 = arith.constant 0 : i32
    return %c0_i32, %arg1 : i32, i32
  }
  func.func @transform_5(%arg0: i32, %arg1: i32, %arg2: i32) -> (i32, i32) {
    %c0_i32 = arith.constant 0 : i32
    %c0_i32_0 = arith.constant 0 : i32
    return %c0_i32, %arg1 : i32, i32
  }
  func.func @transform_6(%arg0: i32, %arg1: i32, %arg2: i32) -> (i32, i32) {
    %c0_i32 = arith.constant 0 : i32
    %c0_i32_0 = arith.constant 0 : i32
    return %c0_i32, %arg1 : i32, i32
  }
  func.func @transform_7(%arg0: i32, %arg1: i32, %arg2: i32) -> (i32, i32) {
    %c0_i32 = arith.constant 0 : i32
    return %arg0, %arg1 : i32, i32
  }
}

</mosaic_0001>

<bundles_post_ra>
// kernel: tpu_custom_call.1
= control target key start
LH: loop header
LB: loop body
LE: loop exit
PB: predicated region body
PF: predicated region fallthrough
CT: control target
= control target key end

     0   :  { %12 = vsyncpa [#allocation5], 0  ;;  %s552_s0 = inlined_call_operand.hbm [shape: f32[8,128], index: 0, kind: input, shape index: {}]   ;;  %s553_s1 = inlined_call_operand.hbm [shape: bf16[128,128], index: 1, kind: input, shape index: {}]   ;;  %s554_s2 = inlined_call_operand.hbm [shape: bf16[128,128], index: 2, kind: input, shape index: {}]   ;;  %s555_s3 = inlined_call_operand.vmem [shape: f32[1,128], index: 3, kind: input, shape index: {}]   ;;  %s556_s4 = inlined_call_operand.vmem [shape: f32[1,128], index: 4, kind: input, shape index: {}]   ;;  %s557_s5 = inlined_call_operand.vmem [shape: f32[1,128], index: 5, kind: input, shape index: {}]   ;;  %s558_s6 = inlined_call_operand.vmem [shape: f32[1,128], index: 6, kind: input, shape index: {}]   ;;  %s559_s7 = inlined_call_operand.hbm [shape: f32[8,128], index: 7, kind: output, shape index: {}]  }
   0x1   :  { %13 = vsyncpa [#allocation8], 0  ;;  %s30_s26 = sshll.u32 %s553_s1, 4  ;;  %s31_s26 = int_to_ptr.hbm [resolvable:$true] %s30_s26 }
   0x2   :  { %14 = vsyncpa [#allocation6], 0  ;;  %s479_s27 = smov [#allocation7]   ;;  %s20_s8 = sshll.u32 %s552_s0, 4  ;;  %s21_s8 = int_to_ptr.hbm [resolvable:$true] %s20_s8 }
   0x3   :  { %s32_s28 = sshll.u32 %s479_s27, 4  ;;  %s480_s9 = smov 64   ;;  %s33_s28 = int_to_ptr.vmem [resolvable:$true] %s32_s28 }
   0x4   :  { %s481_s10 = smov 4   ;;  %s482_s11 = smov [#allocation4]  }
   0x5   :  { %38 = dma.hbm_to_vmem [thread:$0]  %s31_s26, 1024, %s33_s28, [#allocation8], %s480_s9, %s480_s9, %s481_s10  }
   0x6   :  { %s22_s12 = sshll.u32 %s482_s11, 4  ;;  %s43_s15 = sshll.u32 %s554_s2, 4  ;;  %s23_s12 = int_to_ptr.vmem [resolvable:$true] %s22_s12  ;;  %s44_s15 = int_to_ptr.hbm [resolvable:$true] %s43_s15 }
   0x7   :  { %25 = dma.hbm_to_vmem [thread:$0]  %s21_s8, 128, %s23_s12, [#allocation5]  }
   0x8   :  { %s483_s1 = smov [#allocation9]  }
   0x9   :  { %s45_s16 = sshll.u32 %s483_s1, 4  ;;  %s46_s16 = int_to_ptr.vmem [resolvable:$true] %s45_s16 }
   0xa   :  { %51 = dma.hbm_to_vmem [thread:$0]  %s44_s15, 1024, %s46_s16, [#allocation8], %s480_s9, %s480_s9, %s481_s10  }
   0xb   :  { %473 = dma.done.wait [#allocation5], 128  }
   0xc   :  { %474 = vsyncadd [#allocation5], 4294967168 }
   0xd   :  { %475 = dma.done.wait [#allocation8], 2048  }
   0xe   :  { %476 = vsyncadd [#allocation8], 4294965248  ;;  %v360_v0 = vld [vmem:[#allocation7 + $0x38] sm:$0xff]  ;;  %v359_v2 = vld [vmem:[#allocation7 + $0x30] sm:$0xff]  ;;  %s484_s24 = smov [#allocation10]  }
   0xf   :  { %v368_v1 = vld [vmem:[#allocation9 + $0x38] sm:$0xff]  ;;  %155 = vmatpush.bf16.msra.mxu0 %v360_v0  ;;  %v367_v3 = vld [vmem:[#allocation9 + $0x30] sm:$0xff]  ;;  %v358_v4 = vld [vmem:[#allocation7 + $0x28] sm:$0xff]  ;;  %s275_s25 = sshll.u32 %s484_s24, 4  ;;  %s276_s25 = int_to_ptr.vmem [resolvable:$true] %s275_s25 }
  0x10   :  { %235 = vmatpush.bf16.msra.mxu1 %v368_v1  ;;  %v366_v5 = vld [vmem:[#allocation9 + $0x28] sm:$0xff]  ;;  %v357_v6 = vld [vmem:[#allocation7 + $0x20] sm:$0xff]  ;;  %v356_v8 = vld [vmem:[#allocation7 + $0x18] sm:$0xff] }
  0x11   :  { %v365_v7 = vld [vmem:[#allocation9 + $0x20] sm:$0xff]  ;;  %v364_v9 = vld [vmem:[#allocation9 + $0x18] sm:$0xff]  ;;  %v355_v10 = vld [vmem:[#allocation7 + $0x10] sm:$0xff] }
  0x12   :  { %v363_v11 = vld [vmem:[#allocation9 + $0x10] sm:$0xff]  ;;  %v375_v12 = vld [vmem:[%s555_s3] ss:$0 sm:$0xff]  ;;  %v354_v13 = vld [vmem:[#allocation7 + $0x8] sm:$0xff] }
  0x13   :  { %156 = vmatpush.bf16.msra.mxu0 %v359_v2  ;;  %v362_v14 = vld [vmem:[#allocation9 + $0x8] sm:$0xff]  ;;  %v78_v15 = vld [vmem:[#allocation4] sm:$0xff]  ;;  %v353_v17 = vld [vmem:[#allocation7] sm:$0xff] }
  0x14   :  { %236 = vmatpush.bf16.msra.mxu1 %v367_v3  ;;  %v88_v16 = vmul.f32 %v375_v12, %v78_v15  ;;  %v361_v18 = vld [vmem:[#allocation9] sm:$0xff]  ;;  %v84_v19 = vpack.c.bf16 %v78_v15, %v78_v15  ;;  %v253_v21 = vld [vmem:[%s556_s4] sm:$0x1] }
  0x15   :  { %v255_v22 = vld [vmem:[%s558_s6] sm:$0x1]  ;;  %s277_s6 = sshll.u32 %s559_s7, 4  ;;  %s278_s6 = int_to_ptr.hbm [resolvable:$true] %s277_s6 }
  0x16   :  { %v89_v20 = vpack.c.bf16 %v88_v16, %v88_v16  ;;  %v256_v23 = vmul.f32 %v255_v22, %v253_v21  ;;  %v254_v24 = vld [vmem:[%s557_s5] sm:$0x1] }
  0x17   :  { %157 = vmatpush.bf16.msra.mxu0 %v358_v4  ;;  %v376_v26 = vld [vmem:[%s556_s4] ss:$0 sm:$0xff] }
  0x18   :  { %237 = vmatpush.bf16.msra.mxu1 %v366_v5  ;;  %v257_v25 = vadd.f32 %v256_v23, %v254_v24 }
  0x1a   :  { %v266_v30 = vperm.slane %v257_v25, 0 }
  0x1b   :  { %158 = vmatpush.bf16.msra.mxu0 %v357_v6 }
  0x1c   :  { %238 = vmatpush.bf16.msra.mxu1 %v365_v7 }
  0x1f   :  { %159 = vmatpush.bf16.msra.mxu0 %v356_v8 }
  0x20   :  { %239 = vmatpush.bf16.msra.mxu1 %v364_v9 }
  0x23   :  { %160 = vmatpush.bf16.msra.mxu0 %v355_v10 }
  0x24   :  { %240 = vmatpush.bf16.msra.mxu1 %v363_v11 }
  0x27   :  { %161 = vmatpush.bf16.msra.mxu0 %v354_v13 }
  0x28   :  { %241 = vmatpush.bf16.msra.mxu1 %v362_v14 }
  0x2b   :  { %162 = vmatpush.bf16.msra.mxu0 %v353_v17 }
  0x2c   :  { %242 = vmatpush.bf16.msra.mxu1 %v361_v18 }
  0x2e   :  { %163 = vmatmul.bf16.vlgmr.msra.gmra.mxu0 %v84_v19 }
  0x2f   :  { %243 = vmatmul.bf16.vlgmr.msra.gmra.mxu1 %v89_v20 }
  0xab   :  { %v164_v27 = vpop.f32.mrf.mxu0 }
  0xac   :  { %v244_v28 = vpop.f32.mrf.mxu1 }
  0xad   :  { %v263_v29 = vmul.f32 %v376_v26, %v244_v28 }
  0xaf   :  { %v264_v31 = vadd.f32 %v263_v29, %v164_v27 }
  0xb1   :  { %v268_v32 = vadd.f32 %v266_v30, %v264_v31 }
  0xb3   :  { %269 = vst [vmem:[#allocation10] sm:$0xff] %v268_v32  ;;  %v166_v33 = vpop.f32.mrf.mxu0 }
  0xb4   :  { %v246_v34 = vpop.f32.mrf.mxu1  ;;  %280 = dma.vmem_to_hbm [thread:$0]  %s276_s25, 128, %s278_s6, [#allocation6]  }
  0xb5   :  { %477 = dma.done.wait [#allocation6], 128  }
  0xb6   :  { %478 = vsyncadd [#allocation6], 4294967168 }
  0xb7   :  { %285 = vsyncpa [#allocation5], 1 }
  0xb8   :  { %286 = vsyncpa [#allocation8], 1 }
  0xb9   :  { %287 = vsyncpa [#allocation6], 1 }

</bundles_post_ra>
